<compile_context>
chip_gen: v7x
topology: tpu7x:2x2x1
jax: 0.10.0
libtpu: 0.0.40
codegen_flags: <defaults>
</compile_context>

<pallas_src>
import functools

import jax
import jax.numpy as jnp
from jax.experimental import pallas as pl
from jax.experimental.pallas import tpu as pltpu


# Windows at least this large are split into two concurrent DMAs so multiple
# DMA engines (and v7x's 3.2 TB/s HBM) are used; smaller copies use a single
# DMA to avoid extra issue latency.
_SPLIT_BYTES = 4 * 1024 * 1024


def _copy_kernel(count_ref, data_ref, out_ref, new_count_ref, sem,
                 *, n, bs, split):
    """Copy data[count:count+bs, :] (HBM) -> out (HBM) with one or two DMAs."""
    # count_ref    : (1,) int32 scalar-prefetch ref in SMEM (current offset).
    # data_ref     : raw HBM ref of the full (N, D) buffer (memory_space=ANY).
    # out_ref      : raw HBM ref of the (bs, D) output    (memory_space=ANY).
    # new_count_ref: (1,) int32 SMEM output (count + bs for the next call).
    # sem          : (2,) DMA completion semaphores.
    start = count_ref[0]
    # Clamp so the DMA is always fully in bounds (host guarantees bs <= n).
    # TODO(synk): PyTorch would return a *short* slice when count + bs > N;
    # with a fixed output shape we instead return the last bs rows.
    start = jnp.maximum(jnp.minimum(start, n - bs), 0)

    if split:
        half = bs // 2
        cp0 = pltpu.make_async_copy(
            data_ref.at[pl.ds(start, half), :],
            out_ref.at[pl.ds(0, half), :], sem.at[0])
        cp1 = pltpu.make_async_copy(
            data_ref.at[pl.ds(start + half, half), :],
            out_ref.at[pl.ds(half, half), :], sem.at[1])
        cp0.start()
        cp1.start()
        cp0.wait()
        cp1.wait()
    else:
        cp = pltpu.make_async_copy(
            data_ref.at[pl.ds(start, bs), :], out_ref, sem.at[0])
        cp.start()
        cp.wait()

    new_count_ref[0] = count_ref[0] + bs


@functools.lru_cache(maxsize=None)
def _build_take_rows(bs, n, d, dtype_name):
    dtype = jnp.dtype(dtype_name)
    window_bytes = bs * d * dtype.itemsize
    split = (bs % 2 == 0) and (bs >= 2) and (window_bytes >= _SPLIT_BYTES)
    kernel = functools.partial(_copy_kernel, n=n, bs=bs, split=split)
    fn = pl.pallas_call(
        kernel,
        out_shape=(
            jax.ShapeDtypeStruct((bs, d), dtype),        # copied rows
            jax.ShapeDtypeStruct((1,), jnp.int32),       # updated count
        ),
        grid_spec=pltpu.PrefetchScalarGridSpec(
            num_scalar_prefetch=1,                       # `count` -> SMEM
            grid=(1,),
            in_specs=[
                pl.BlockSpec(memory_space=pl.ANY),       # data stays in HBM
            ],
            out_specs=(
                pl.BlockSpec(memory_space=pl.ANY),       # written via DMA
                pl.BlockSpec(memory_space=pltpu.MemorySpace.SMEM),
            ),
            scratch_shapes=[pltpu.SemaphoreType.DMA((2,))],
        ),
        compiler_params=pltpu.CompilerParams(
            dimension_semantics=("arbitrary",)),
        cost_estimate=pl.CostEstimate(
            flops=0, transcendentals=0,
            bytes_accessed=2 * window_bytes),
    )
    return jax.jit(fn)


def pallas_take_rows(data, count, bs):
    """Return (data[count:count+bs], count + bs) via a direct HBM->HBM DMA."""
    n, d = data.shape
    if bs > n:
        raise ValueError(f"batch size {bs} exceeds stored rows {n}")
    fn = _build_take_rows(int(bs), int(n), int(d), data.dtype.name)
    return fn(count, data)


class DeterministicNetwork:
    """JAX/Pallas port: returns stored rows sequentially, bs at a time."""

    def __init__(self, data):
        self.data = data                                  # (N, D) jnp array
        # Device-resident running offset (no per-call H2D transfer).
        self.count = jnp.zeros((1,), dtype=jnp.int32)

    def __call__(self, x):
        bs = x.shape[0]
        out, self.count = pallas_take_rows(self.data, self.count, bs)
        return out


if __name__ == "__main__":
    key = jax.random.PRNGKey(0)
    k_data, k_x = jax.random.split(key)

    N, D = 8, 128                        # stored data: 8 samples of dim 128
    data = jax.random.normal(k_data, (N, D), dtype=jnp.float32)

    # input x: NCHW-style, only its batch dim matters
    x = jax.random.normal(k_x, (2, 4, 16, 16), dtype=jnp.float32)

    net = DeterministicNetwork(data)

    out1 = net(x)                        # rows 0:2
    out2 = net(x)                        # rows 2:4
    out1, out2 = jax.block_until_ready((out1, out2))

    # sanity check against the reference semantics (plain slicing)
    assert out1.shape == (2, D) and out2.shape == (2, D)
    assert jnp.allclose(out1, data[0:2]) and jnp.allclose(out2, data[2:4])
    assert int(net.count[0]) == 4

    print("KERNEL_OK")
</pallas_src>

<mosaic_0001>
module attributes {stable_mosaic.version = 11 : i64} {
  func.func @_copy_kernel(%arg0: i32, %arg1: memref<1xi32, #tpu.memory_space<smem>>, %arg2: memref<8x128xf32, #tpu.memory_space<any>>, %arg3: memref<2x128xf32, #tpu.memory_space<any>>, %arg4: memref<1xi32, #tpu.memory_space<smem>>, %arg5: memref<2x!tpu.dma_semaphore, #tpu.memory_space<semaphore_mem>>) attributes {dimension_semantics = [#tpu.dimension_semantics<arbitrary>], iteration_bounds = array<i64: 1>, scalar_prefetch = 1 : i64, scratch_operands = 1 : i64, tpu.core_type = #tpu.core_type<tc>, window_params = [{}, {}, {transform_indices = @transform_2, window_bounds = array<i64: 1>}]} {
    %c0 = arith.constant 0 : index
    %0 = memref.load %arg1[%c0] : memref<1xi32, #tpu.memory_space<smem>>
    %c6_i32 = arith.constant 6 : i32
    %1 = arith.minsi %0, %c6_i32 : i32
    %c0_i32 = arith.constant 0 : i32
    %2 = arith.maxsi %1, %c0_i32 : i32
    %c0_i32_0 = arith.constant 0 : i32
    %c0_i32_1 = arith.constant 0 : i32
    %3 = tpu.memref_slice %arg2[%2, %c0_i32_1] : memref<8x128xf32, #tpu.memory_space<any>> -> memref<2x128xf32, #tpu.memory_space<any>>
    %4 = tpu.memref_slice %arg5[%c0_i32_0] : memref<2x!tpu.dma_semaphore, #tpu.memory_space<semaphore_mem>> -> memref<1x!tpu.dma_semaphore, #tpu.memory_space<semaphore_mem>>
    %5 = tpu.memref_squeeze %4 : memref<1x!tpu.dma_semaphore, #tpu.memory_space<semaphore_mem>> -> memref<!tpu.dma_semaphore, #tpu.memory_space<semaphore_mem>>
    tpu.enqueue_dma source(%3 : memref<2x128xf32, #tpu.memory_space<any>>) target(%arg3 : memref<2x128xf32, #tpu.memory_space<any>>) target_semaphore(%5 : memref<!tpu.dma_semaphore, #tpu.memory_space<semaphore_mem>>)
    %c0_i32_2 = arith.constant 0 : i32
    %c0_i32_3 = arith.constant 0 : i32
    %6 = tpu.memref_slice %arg2[%2, %c0_i32_3] : memref<8x128xf32, #tpu.memory_space<any>> -> memref<2x128xf32, #tpu.memory_space<any>>
    %7 = tpu.memref_slice %arg5[%c0_i32_2] : memref<2x!tpu.dma_semaphore, #tpu.memory_space<semaphore_mem>> -> memref<1x!tpu.dma_semaphore, #tpu.memory_space<semaphore_mem>>
    %8 = tpu.memref_squeeze %7 : memref<1x!tpu.dma_semaphore, #tpu.memory_space<semaphore_mem>> -> memref<!tpu.dma_semaphore, #tpu.memory_space<semaphore_mem>>
    tpu.wait_dma2 semaphore(%8 : memref<!tpu.dma_semaphore, #tpu.memory_space<semaphore_mem>>) src(%6 : memref<2x128xf32, #tpu.memory_space<any>>) dst(%arg3 : memref<2x128xf32, #tpu.memory_space<any>>)
    %c0_4 = arith.constant 0 : index
    %9 = memref.load %arg1[%c0_4] : memref<1xi32, #tpu.memory_space<smem>>
    %c2_i32 = arith.constant 2 : i32
    %10 = arith.addi %9, %c2_i32 : i32
    %c0_5 = arith.constant 0 : index
    %11 = memref.load %arg4[%c0_5] : memref<1xi32, #tpu.memory_space<smem>>
    memref.store %10, %arg4[%c0_5] : memref<1xi32, #tpu.memory_space<smem>>
    return
  }
  func.func @transform_2(%arg0: i32, %arg1: memref<1xi32, #tpu.memory_space<smem>>) -> i32 {
    %c0_i32 = arith.constant 0 : i32
    %c0_i32_0 = arith.constant 0 : i32
    return %c0_i32 : i32
  }
}

</mosaic_0001>

<bundles_post_ra>
// kernel: tpu_custom_call.1
= control target key start
LH: loop header
LB: loop body
LE: loop exit
PB: predicated region body
PF: predicated region fallthrough
CT: control target
= control target key end

     0   :  { %10 = vsyncpa [#allocation6], 0  ;;  %s94_s23 = smov [#allocation2]   ;;  %s95_s24 = smov [#allocation7]   ;;  %s148_s0 = inlined_call_operand.<no memory space> [shape: s32[1], index: 0, kind: input, shape index: {}]   ;;  %s149_s1 = inlined_call_operand.hbm [shape: f32[8,128], index: 1, kind: input, shape index: {}]   ;;  %s150_s2 = inlined_call_operand.hbm [shape: f32[2,128], index: 2, kind: output, shape index: {0}]   ;;  %s151_s3 = inlined_call_operand.hbm [shape: s32[1], index: 3, kind: output, shape index: {1}]  }
   0x1   :  { %p12_p0 = scmp.lt.s32.totalorder %s148_s0, 6  ;;  %p66_p1 = scmp.gt.s32.totalorder %s148_s0, 0 }
   0x2   :  { %s96_s25 = smov 0  }
   0x3   :  { %s13_s18 = scalar_select %p12_p0, %s148_s0, 6 }
   0x5   :  { %s153_s18 = smov (!%p66_p1, %s13_s18), 0 }
   0x6   :  { %s71_s19 = sshll.u32 %s153_s18, 4 }
   0x7   :  { %s17_s22 = scalar_lea.hbm %s149_s1, %s71_s19 }
   0x8   :  { %30 = dma.general %s17_s22, 32, %s150_s2, %s94_s23, %s95_s24, [#allocation8], %s96_s25, 0  }
   0x9   :  { %90 = dma.done.wait [#allocation2], 32 }
   0xa   :  { %91 = vsyncadd [#allocation2], 4294967264  ;;  %s35_s30 = sadd.s32 2, %s148_s0  ;;  %s80_s6 = scalar_lea.hbm %s151_s3, 16 }
   0xb   :  { %37 = sst [smem:[#allocation5]] %s35_s30  ;;  %p81_p2 = scmp.ne.s32.totalorder %s151_s3, %s80_s6 }
   0xc   :  { %p84_p3 = scmp.lt.u32.totalorder %s80_s6, %s151_s3 }
   0xe   :  { %p86_p4 = pnand %p84_p3, %p81_p2 }
  0x10   :  { %89 = shalt.err (!%p86_p4)
}
  0x11   :  { %s97_s2 = smov [#allocation5]  }
  0x12   :  { %45 = dma.smem_to_hbm %s97_s2, 16, %s151_s3, [#allocation6]  }
  0x13   :  { %92 = dma.done.wait [#allocation6], 16  }
  0x14   :  { %93 = vsyncadd [#allocation6], 4294967280 }
  0x15   :  { %49 = sfence }
  0x16   :  { %50 = vsyncpa [#allocation6], 1 }
  0x17   :  { %51 = vsyncmov [#allocation2] }
  0x1a   :  { %s52_s0 = vpop.sfrf %51 }
  0x1b   :  { %p72_p5 = scmp.ne.s32.totalorder %s52_s0, 0 }
  0x1d   :  { %56 = shalt.err (%p72_p5)  }
  0x1e   :  { %58 = vsyncmov [#allocation2 + $0x1] }
  0x21   :  { %s59_s12 = vpop.sfrf %58 }
  0x22   :  { %p73_p6 = scmp.ne.s32.totalorder %s59_s12, 0 }
  0x24   :  { %63 = shalt.err (%p73_p6)  }

</bundles_post_ra>
